<compile_context>
chip_gen: v5e
topology: v5e:2x2
jax: 0.10.0
libtpu: 0.0.40
codegen_flags: <defaults>
</compile_context>

<pallas_src>
import functools

import jax
import jax.numpy as jnp
from jax.experimental import pallas as pl
from jax.experimental.pallas import tpu as pltpu


def _ce_kernel(logits_ref, tgt_ref, out_ref):
    # logits_ref: (1, C, T)  -- channels on sublanes, pixels on lanes
    # tgt_ref:    (1, 1, T) int32
    # out_ref:    (1, 1, T) float32
    x = logits_ref[0].astype(jnp.float32)                # (C, T)
    t = tgt_ref[0]                                       # (1, T)

    # numerically stable log-sum-exp over the channel (sublane) axis
    m = jnp.max(x, axis=0, keepdims=True)                # (1, T)
    lse = m + jnp.log(jnp.sum(jnp.exp(x - m), axis=0, keepdims=True))

    # gather logit at target class via one-hot compare+select (no dyn. gather)
    class_ids = jax.lax.broadcasted_iota(jnp.int32, x.shape, dimension=0)
    picked = jnp.sum(jnp.where(class_ids == t, x, 0.0), axis=0, keepdims=True)

    # CE = logsumexp(logits) - logit[target]  (== -log_softmax[target])
    out_ref[0] = lse - picked


@functools.partial(jax.jit, static_argnames=("tile_hw",))
def cross_entropy_2d(inputs, targets, tile_hw=2048):
    """inputs: (N, C, H, W) float; targets: (N, H, W) int. Returns (N, H, W) f32."""
    N, C, H, W = inputs.shape
    HW = H * W
    itemsize = jnp.dtype(inputs.dtype).itemsize

    # Pick a lane-dense pixel tile: multiple of 128 (or the full extent when
    # HW <= 128), capped so the double-buffered logits block stays small
    # enough for the 64 MiB VMEM on v7x while amortizing per-step overhead.
    if HW <= 128:
        tile = HW
    else:
        max_tile_by_vmem = max(
            128, ((8 * 1024 * 1024) // max(1, C * itemsize)) // 128 * 128
        )
        tile = min(tile_hw, HW, max_tile_by_vmem)
        tile = max(128, (tile // 128) * 128)

    # Free views: NCHW -> (N, C, HW) is contiguous; targets -> (N, 1, HW).
    logits = inputs.reshape(N, C, HW)
    tgt = targets.reshape(N, 1, HW).astype(jnp.int32)

    grid = (N, pl.cdiv(HW, tile))   # tail handled by partial-block masking

    logits_block_bytes = C * tile * itemsize
    vmem_limit = int(
        min(48 * 1024 * 1024, max(16 * 1024 * 1024, 4 * logits_block_bytes))
    )

    out = pl.pallas_call(
        _ce_kernel,
        out_shape=jax.ShapeDtypeStruct((N, 1, HW), jnp.float32),
        grid_spec=pltpu.PrefetchScalarGridSpec(
            num_scalar_prefetch=0,
            grid=grid,
            in_specs=[
                pl.BlockSpec((1, C, tile), lambda n, p: (n, 0, p)),
                pl.BlockSpec((1, 1, tile), lambda n, p: (n, 0, p)),
            ],
            out_specs=pl.BlockSpec((1, 1, tile), lambda n, p: (n, 0, p)),
        ),
        compiler_params=pltpu.CompilerParams(
            dimension_semantics=("parallel", "parallel"),
            vmem_limit_bytes=vmem_limit,
        ),
    )(logits, tgt)

    return out.reshape(N, H, W)


def _reference(inputs, targets):
    # pure-JAX reference: -log_softmax(inputs, axis=1) gathered at targets
    logp = jax.nn.log_softmax(inputs.astype(jnp.float32), axis=1)
    picked = jnp.take_along_axis(
        logp, targets[:, None, :, :].astype(jnp.int32), axis=1
    )
    return -picked[:, 0, :, :]


if __name__ == "__main__":
    key = jax.random.PRNGKey(0)
    k1, k2 = jax.random.split(key)

    N, C, H, W = 2, 4, 16, 16
    x = jax.random.normal(k1, (N, C, H, W), dtype=jnp.float32)
    t = jax.random.randint(k2, (N, H, W), 0, C, dtype=jnp.int32)

    loss = cross_entropy_2d(x, t)
    jax.block_until_ready(loss)

    ref = _reference(x, t)
    assert loss.shape == (N, H, W)
    assert jnp.allclose(loss, ref, atol=1e-5, rtol=1e-5)
    print("KERNEL_OK")
</pallas_src>

<mosaic_0001>
module attributes {stable_mosaic.version = 11 : i64} {
  func.func @_ce_kernel(%arg0: i32, %arg1: i32, %arg2: memref<1x4x256xf32, #tpu.memory_space<vmem>>, %arg3: memref<1x1x256xi32, #tpu.memory_space<vmem>>, %arg4: memref<1x1x256xf32, #tpu.memory_space<vmem>>) attributes {dimension_semantics = [#tpu.dimension_semantics<parallel>, #tpu.dimension_semantics<parallel>], iteration_bounds = array<i64: 2, 1>, scalar_prefetch = 0 : i64, scratch_operands = 0 : i64, tpu.core_type = #tpu.core_type<tc>, window_params = [{transform_indices = @transform_0, window_bounds = array<i64: 1, 4, 256>}, {transform_indices = @transform_1, window_bounds = array<i64: 1, 1, 256>}, {transform_indices = @transform_2, window_bounds = array<i64: 1, 1, 256>}]} {
    %c0 = arith.constant 0 : index
    %c0_0 = arith.constant 0 : index
    %c0_1 = arith.constant 0 : index
    %0 = vector.load %arg2[%c0, %c0_0, %c0_1] : memref<1x4x256xf32, #tpu.memory_space<vmem>>, vector<1x4x256xf32>
    %1 = vector.shape_cast %0 : vector<1x4x256xf32> to vector<4x256xf32>
    %c0_2 = arith.constant 0 : index
    %c0_3 = arith.constant 0 : index
    %c0_4 = arith.constant 0 : index
    %2 = vector.load %arg3[%c0_2, %c0_3, %c0_4] : memref<1x1x256xi32, #tpu.memory_space<vmem>>, vector<1x1x256xi32>
    %3 = vector.shape_cast %2 : vector<1x1x256xi32> to vector<1x256xi32>
    %cst = arith.constant dense<0xFF800000> : vector<256xf32>
    %4 = vector.multi_reduction <maximumf>, %1, %cst [0] : vector<4x256xf32> to vector<256xf32>
    %5 = vector.shape_cast %4 : vector<256xf32> to vector<1x256xf32>
    %6 = vector.broadcast %5 : vector<1x256xf32> to vector<4x256xf32>
    %7 = arith.subf %1, %6 : vector<4x256xf32>
    %8 = math.exp %7 : vector<4x256xf32>
    %cst_5 = arith.constant dense<0.000000e+00> : vector<256xf32>
    %9 = vector.multi_reduction <add>, %8, %cst_5 [0] : vector<4x256xf32> to vector<256xf32>
    %10 = vector.shape_cast %9 : vector<256xf32> to vector<1x256xf32>
    %11 = math.log %10 : vector<1x256xf32>
    %12 = arith.addf %5, %11 : vector<1x256xf32>
    %13 = tpu.iota {dimensions = array<i32: 0>} : vector<4x256xi32>
    %14 = vector.broadcast %3 : vector<1x256xi32> to vector<4x256xi32>
    %15 = arith.cmpi eq, %13, %14 : vector<4x256xi32>
    %cst_6 = arith.constant 0.000000e+00 : f32
    %16 = vector.broadcast %cst_6 : f32 to vector<4x256xf32>
    %17 = arith.select %15, %1, %16 : vector<4x256xi1>, vector<4x256xf32>
    %cst_7 = arith.constant dense<0.000000e+00> : vector<256xf32>
    %18 = vector.multi_reduction <add>, %17, %cst_7 [0] : vector<4x256xf32> to vector<256xf32>
    %19 = vector.shape_cast %18 : vector<256xf32> to vector<1x256xf32>
    %20 = arith.subf %12, %19 : vector<1x256xf32>
    %c0_8 = arith.constant 0 : index
    %c0_9 = arith.constant 0 : index
    %c0_10 = arith.constant 0 : index
    %21 = vector.load %arg4[%c0_8, %c0_9, %c0_10] : memref<1x1x256xf32, #tpu.memory_space<vmem>>, vector<1x1x256xf32>
    %22 = vector.shape_cast %21 : vector<1x1x256xf32> to vector<1x256xf32>
    %23 = vector.shape_cast %20 : vector<1x256xf32> to vector<1x1x256xf32>
    tpu.vector_store %arg4[%c0_8, %c0_9, %c0_10], %23 {strides = array<i32>} : memref<1x1x256xf32, #tpu.memory_space<vmem>>, vector<1x1x256xf32>,
    return
  }
  func.func @transform_0(%arg0: i32, %arg1: i32) -> (i32, i32, i32) {
    %c0_i32 = arith.constant 0 : i32
    %c0_i32_0 = arith.constant 0 : i32
    return %arg0, %c0_i32, %arg1 : i32, i32, i32
  }
  func.func @transform_1(%arg0: i32, %arg1: i32) -> (i32, i32, i32) {
    %c0_i32 = arith.constant 0 : i32
    %c0_i32_0 = arith.constant 0 : i32
    return %arg0, %c0_i32, %arg1 : i32, i32, i32
  }
  func.func @transform_2(%arg0: i32, %arg1: i32) -> (i32, i32, i32) {
    %c0_i32 = arith.constant 0 : i32
    %c0_i32_0 = arith.constant 0 : i32
    return %arg0, %c0_i32, %arg1 : i32, i32, i32
  }
}

</mosaic_0001>

<bundles_post_ra>
// kernel: cross_entropy_2d.1
= control target key start
LH: loop header
LB: loop body
LE: loop exit
PB: predicated region body
PF: predicated region fallthrough
CT: control target
= control target key end

     0   :  { %s488_s9 = smov 0   ;;  %s490_s10 = smov 0   ;;  %s539_s0 = inlined_call_operand.vmem [shape: f32[2,4,256], index: 0, kind: input, shape index: {}]   ;;  %s540_s1 = inlined_call_operand.vmem [shape: s32[2,1,256], index: 1, kind: input, shape index: {}]   ;;  %s541_s2 = inlined_call_operand.vmem [shape: f32[2,1,256], index: 2, kind: output, shape index: {}]  }
   0x1   :  { %s492_s11 = smov 0  }
   0x2 LB: > { %s24_s12 = sadd.s32 1, %s467_s10  ;;  %p411_p0 = scmp.ge.s32.totalorder %s471_s11, 1  ;;  %s471_s11 = sphi %s492_s11, %s12_s11   ;;  %s467_s10 = sphi %s490_s10, %s543_s10   ;;  %s463_s9 = sphi %s488_s9, %s542_s9  }
   0x3   : > { %p26_p1 = scmp.ge.s32.totalorder %s24_s12, 2  ;;  %p149_p2 = scmp.lt.s32.totalorder %s471_s11, 3 }
   0x5   : > { %s545_s12 = smov (%p26_p1, %s24_s12), 0  ;;  %p150_p3 = pnand %p411_p0, %p149_p2 }
   0x6   : > { %p187_p4 = scmp.lt.s32.totalorder (!%p150_p3), %s463_s9, 1 }
   0x7   : > { %153 = sbr.rel (%p150_p3) target bundleno = 90 (0x5a), region = 28 }
   0xc   : > { %s547_s9 = smov (!%p187_p4, %s463_s9), 1  ;;  %vm222_vm0 = vcmask 1043456   ;;  %v271_v22 = vlaneseq  ;;  %vm303_vm3 = vcmask 1040384  }
   0xd   : > { %s418_s13 = sshll.u32 %s547_s9, 3  ;;  %s414_s17 = sshll.u32 %s547_s9, 1 }
   0xe   : > { %s194_s16 = scalar_lea.vmem %s539_s0, %s418_s13  ;;  %s203_s20 = scalar_lea.vmem %s540_s1, %s414_s17  ;;  %v272_v28 = vshrl.u32 %v271_v22, 7  ;;  %vm308_vm4 = vcmp.lt.s32.totalorder %v271_v22, 256 }
   0xf   : > { %v214_v0 = vld [vmem:[%s194_s16] sm:$0xff]  ;;  %s212_s23 = scalar_lea.vmem %s541_s2, %s414_s17 }
  0x10   : > { %217 = vst [vmem:[#allocation1] ss:$2 sm:$0xff] %v214_v0  ;;  %v215_v23 = vld [vmem:[%s203_s20] sm:$0x3] }
  0x11   : > { %v273_v31 = vperm.slane %v215_v23, 0  ;;  %v274_v32 = vperm.slane %v215_v23, 1 }
  0x13   : > { %vm275_vm1 = vcmp.eq.s32.totalorder %v272_v28, %v273_v31  ;;  %vm276_vm2 = vcmp.eq.s32.totalorder %v272_v28, %v274_v32 }
  0x17   : > { %v218_v1 = vld.sshfl [vmem:[#allocation1] sm:$0xff pattern:$0x75316420]  ;;  %v219_v2 = vld.sshfl [vmem:[#allocation1 + $0x8] sm:$0xff pattern:$0x75316420] }
  0x18   : > { %v223_v3 = vsel %vm222_vm0, %v218_v1, -inf  ;;  %v230_v4 = vsel %vm222_vm0, %v219_v2, -inf }
  0x19   : > { %v224_v5 = vrot.slane %v223_v3, 4  ;;  %v231_v6 = vrot.slane %v230_v4, 4 }
  0x1b   : > { %v225_v7 = vmax.f32 %v223_v3, %v224_v5  ;;  %v232_v8 = vmax.f32 %v230_v4, %v231_v6 }
  0x1d   : > { %v226_v9 = vrot.slane %v225_v7, 2  ;;  %v233_v10 = vrot.slane %v232_v8, 2 }
  0x1f   : > { %v227_v11 = vmax.f32 %v225_v7, %v226_v9  ;;  %v234_v12 = vmax.f32 %v232_v8, %v233_v10 }
  0x21   : > { %v228_v13 = vrot.slane %v227_v11, 1  ;;  %v235_v14 = vrot.slane %v234_v12, 1 }
  0x23   : > { %v236_v15 = vmax.f32 %v234_v12, %v235_v14  ;;  %v229_v16 = vmax.f32 %v227_v11, %v228_v13 }
  0x25   : > { %v239_v17 = vrot.slane %v236_v15, 4 }
  0x27   : > { %v240_v18 = vsel %vm222_vm0, %v229_v16, %v239_v17 }
  0x28   : > { %v242_v19 = vsub.f32 %v214_v0, %v240_v18 }
  0x2a   : > { %v243_v20 = vmul.f32 1.442695, %v242_v19 }
  0x2c   : > { %443 = vpow2.f32 %v243_v20 }
  0x32   : > { %v444_v21 = vpop.eup %443 }
  0x33   : > { %246 = vst [vmem:[#allocation1] ss:$2 sm:$0xff] %v444_v21 }
  0x3a   : > { %v247_v24 = vld.sshfl [vmem:[#allocation1] sm:$0xff pattern:$0x75316420]  ;;  %v248_v25 = vld.sshfl [vmem:[#allocation1 + $0x8] sm:$0xff pattern:$0x75316420] }
  0x3b   : > { %v251_v26 = vsel %vm222_vm0, %v247_v24, 0.0  ;;  %v258_v27 = vsel %vm222_vm0, %v248_v25, 0.0  ;;  %277 = vst [vmem:[#allocation1] ss:$2 sm:$0xff] %v214_v0 }
  0x3c   : > { %v252_v29 = vrot.slane %v251_v26, 4  ;;  %v259_v30 = vrot.slane %v258_v27, 4 }
  0x3e   : > { %v253_v33 = vadd.f32 %v252_v29, %v251_v26  ;;  %v260_v34 = vadd.f32 %v259_v30, %v258_v27 }
  0x40   : > { %v254_v35 = vrot.slane %v253_v33, 2  ;;  %v261_v36 = vrot.slane %v260_v34, 2 }
  0x42   : > { %v255_v37 = vadd.f32 %v254_v35, %v253_v33  ;;  %v262_v38 = vadd.f32 %v261_v36, %v260_v34  ;;  %v278_v39 = vld.sshfl [vmem:[#allocation1] sm:$0xff pattern:$0x75316420]  ;;  %v279_v40 = vld.sshfl [vmem:[#allocation1 + $0x8] sm:$0xff pattern:$0x75316420] }
  0x43   : > { %v282_v41 = vsel %vm275_vm1, %v278_v39, 0.0  ;;  %v283_v42 = vsel %vm276_vm2, %v279_v40, 0.0 }
  0x44   : > { %v263_v43 = vrot.slane %v262_v38, 1  ;;  %v256_v44 = vrot.slane %v255_v37, 1  ;;  %v284_v45 = vsel %vm222_vm0, %v282_v41, 0.0  ;;  %v291_v46 = vsel %vm222_vm0, %v283_v42, 0.0 }
  0x45   : > { %v285_v47 = vrot.slane %v284_v45, 4  ;;  %v292_v48 = vrot.slane %v291_v46, 4 }
  0x46   : > { %v257_v49 = vadd.f32 %v256_v44, %v255_v37  ;;  %v264_v50 = vadd.f32 %v263_v43, %v262_v38 }
  0x47   : > { %v286_v51 = vadd.f32 %v285_v47, %v284_v45  ;;  %v293_v52 = vadd.f32 %v292_v48, %v291_v46 }
  0x48   : > { %445 = vlog2.f32 %v257_v49 }
  0x49   : > { %447 = vlog2.f32 %v264_v50  ;;  %v287_v53 = vrot.slane %v286_v51, 2  ;;  %v294_v54 = vrot.slane %v293_v52, 2 }
  0x4b   : > { %v295_v55 = vadd.f32 %v294_v54, %v293_v52  ;;  %v288_v56 = vadd.f32 %v287_v53, %v286_v51 }
  0x4d   : > { %v296_v58 = vrot.slane %v295_v55, 1  ;;  %v289_v62 = vrot.slane %v288_v56, 1 }
  0x4e   : > { %v446_v57 = vpop.eup %445 }
  0x4f   : > { %v448_v59 = vpop.eup %447  ;;  %v266_v60 = vmul.f32 0.6931472, %v446_v57  ;;  %v297_v1 = vadd.f32 %v296_v58, %v295_v55  ;;  %v290_v2 = vadd.f32 %v289_v62, %v288_v56 }
  0x50   : > { %v268_v61 = vmul.f32 0.6931472, %v448_v59 }
  0x51   : > { %v269_v63 = vadd.f32 %v266_v60, %v229_v16 }
  0x52   : > { %v270_v0 = vadd.f32 %v268_v61, %v236_v15 }
  0x53   : > { %v298_v4 = vsub.f32 %v269_v63, %v290_v2 }
  0x54   : > { %v299_v3 = vsub.f32 %v270_v0, %v297_v1 }
  0x56   : > { %v302_v5 = vrot.slane %v299_v3, 7 }
  0x58   : > { %v304_v6 = vsel %vm303_vm3, %v298_v4, %v302_v5 }
  0x59   : > { %310 = vst.msk [vmem:[%s212_s23] sm:$0x3] %vm308_vm4, %v304_v6 }
  0x5a PF: > { %s12_s11 = sadd.s32 1, %s471_s11   ;;  %s542_s9 = smov %s467_s10 }
  0x5b   : > { %p9_p5 = scmp.ge.s32.totalorder %s12_s11, 4   ;;  %s543_s10 = smov %s545_s12 }
  0x5d   :  { %11 = sbr.rel (!%p9_p5) target bundleno = 2 (0x2), region = 61 }

</bundles_post_ra>
